<compile_context>
chip_gen: v7x
topology: tpu7x:2x2x1
jax: 0.10.0
libtpu: 0.0.40
codegen_flags: <defaults>
</compile_context>

<pallas_src>
import math

import jax
import jax.numpy as jnp
from jax import lax
from jax.experimental import pallas as pl
from jax.experimental.pallas import tpu as pltpu


def _pick_tile(T: int, preferred: int = 512) -> int:
    """Largest power-of-two tile <= preferred that divides T (falls back to T)."""
    # TODO(synk): for large non-power-of-two T, pad + mask the last tile instead
    # of falling back to TQ=T (a single (T,T) score tile can blow v7x VMEM).
    t = preferred
    while t >= 8:
        if t <= T and T % t == 0:
            return t
        t //= 2
    return T


def _vmem_limit_bytes() -> int:
    """Generation-aware scoped-VMEM budget (v7x has 64 MiB physical, v5e/v6e 128)."""
    try:
        cap = pltpu.get_tpu_info().vmem_capacity_bytes
    except Exception:
        cap = 64 * 1024 * 1024
    return min(48 * 1024 * 1024, cap // 2)


def _flash_head_kernel(qi_ref, kvi_ref,                       # scalar prefetch (SMEM)
                       xq_ref, xkv_ref, wq_ref, wkv_ref, mask_ref,   # inputs
                       o_ref,                                  # output
                       q_scr, m_scr, l_scr, acc_scr):          # VMEM scratch
    step = pl.program_id(1)
    qi = qi_ref[step]
    kvi = kvi_ref[step]
    hp = q_scr.shape[1]

    @pl.when(kvi == 0)
    def _init():
        # Query projection once per (batch, q-tile); 1/sqrt(C) folded into wq
        # on the host.  Accumulate in f32, store the cached tile as bf16.
        q_scr[...] = jnp.dot(xq_ref[0], wq_ref[...],
                             preferred_element_type=jnp.float32
                             ).astype(q_scr.dtype)
        m_scr[...] = jnp.full(m_scr.shape, -jnp.inf, dtype=m_scr.dtype)
        l_scr[...] = jnp.zeros(l_scr.shape, l_scr.dtype)
        acc_scr[...] = jnp.zeros(acc_scr.shape, acc_scr.dtype)

    # Every grid step is live (triangular schedule) -> no pl.when skip.
    # Fused K/V projection: one (TK, C) @ (C, 2*Hp) bf16 MXU pass, f32 acc.
    kv = jnp.dot(xkv_ref[0], wkv_ref[...], preferred_element_type=jnp.float32)
    k = kv[:, :hp].astype(jnp.bfloat16)
    v = kv[:, hp:].astype(jnp.bfloat16)
    q = q_scr[...]

    # Scores: contract head dims directly (no explicit transpose). bf16 x bf16
    # operands, f32 result.
    s = lax.dot_general(q, k, (((1,), (1,)), ((), ())),
                        preferred_element_type=jnp.float32)

    # Causal mask only matters on the diagonal block; select the precomputed
    # additive (-inf above diag) mask with a scalar-predicated select.
    s = s + jnp.where(kvi == qi, mask_ref[...], jnp.zeros_like(mask_ref[...]))

    # Online softmax update (f32 stats / accumulator).
    m_prev = m_scr[...]
    m_new = jnp.maximum(m_prev, jnp.max(s, axis=-1, keepdims=True))
    alpha = jnp.exp(m_prev - m_new)
    p = jnp.exp(s - m_new)
    l_scr[...] = alpha * l_scr[...] + jnp.sum(p, axis=-1, keepdims=True)
    acc_scr[...] = alpha * acc_scr[...] + jnp.dot(
        p.astype(jnp.bfloat16), v, preferred_element_type=jnp.float32)
    m_scr[...] = m_new

    # The diagonal block is the last kv step for this q-tile -> finalize.
    @pl.when(kvi == qi)
    def _finalize():
        inv_l = pl.reciprocal(l_scr[...], approx=False)   # once per q-tile: exact
        o_ref[0] = (acc_scr[...] * inv_l).astype(o_ref.dtype)


def head_forward(x, w_key, w_query, w_value, *, q_tile=512):
    """Single causal self-attention head (matches the PyTorch `Head.forward`).

    x:                  (B, T, C) float32
    w_key/query/value:  nn.Linear weights, shape (head_size, C), bias-free.
    Returns:            (B, T, head_size) in x.dtype
    """
    B, T, C = x.shape
    H = w_key.shape[0]
    # Pad the head dim to a lane-dense multiple of 128 (zero columns are
    # mathematically inert: they don't change q.k and contribute 0 to out).
    Hp = ((max(H, 128) + 127) // 128) * 128
    scale = 1.0 / math.sqrt(C)

    def prep(w):  # (H, C) -> (C, Hp) f32, zero-padded columns
        wt = jnp.transpose(w).astype(jnp.float32)
        return jnp.pad(wt, ((0, 0), (0, Hp - H)))

    # bf16 MXU operands; fold 1/sqrt(C) into the Q projection.
    wq = (prep(w_query) * jnp.float32(scale)).astype(jnp.bfloat16)          # (C, Hp)
    wkv = jnp.concatenate([prep(w_key), prep(w_value)], axis=1
                          ).astype(jnp.bfloat16)                            # (C, 2*Hp)
    x_bf = x.astype(jnp.bfloat16)

    TQ = _pick_tile(T, q_tile)          # TK == TQ
    nq = T // TQ

    # Triangular schedule: only causally-live (qi, kvi) pairs, kv index last
    # within each q-tile so the diagonal block is the finalize step.
    qi_steps, kvi_steps = [], []
    for qi in range(nq):
        for kvi in range(qi + 1):
            qi_steps.append(qi)
            kvi_steps.append(kvi)
    qi_arr = jnp.asarray(qi_steps, dtype=jnp.int32)
    kvi_arr = jnp.asarray(kvi_steps, dtype=jnp.int32)
    n_steps = len(qi_steps)

    # Precomputed additive causal mask for the diagonal block (0 below/on the
    # diagonal, -inf above); constant block -> DMA'd once, stays resident.
    row = jnp.arange(TQ, dtype=jnp.int32)[:, None]
    col = jnp.arange(TQ, dtype=jnp.int32)[None, :]
    neg_mask = jnp.where(col <= row, 0.0, -jnp.inf).astype(jnp.float32)

    grid = (B, n_steps)

    out_padded = pl.pallas_call(
        _flash_head_kernel,
        out_shape=jax.ShapeDtypeStruct((B, T, Hp), x.dtype),
        grid_spec=pltpu.PrefetchScalarGridSpec(
            num_scalar_prefetch=2,
            grid=grid,
            in_specs=[
                # x tile feeding the Q projection
                pl.BlockSpec((1, TQ, C), lambda b, s, qi_r, kvi_r: (b, qi_r[s], 0)),
                # x tile feeding the fused K/V projection
                pl.BlockSpec((1, TQ, C), lambda b, s, qi_r, kvi_r: (b, kvi_r[s], 0)),
                # scaled Q weight
                pl.BlockSpec((C, Hp), lambda b, s, qi_r, kvi_r: (0, 0)),
                # fused [wk | wv]
                pl.BlockSpec((C, 2 * Hp), lambda b, s, qi_r, kvi_r: (0, 0)),
                # diagonal-block additive causal mask
                pl.BlockSpec((TQ, TQ), lambda b, s, qi_r, kvi_r: (0, 0)),
            ],
            out_specs=pl.BlockSpec((1, TQ, Hp),
                                   lambda b, s, qi_r, kvi_r: (b, qi_r[s], 0)),
            scratch_shapes=[
                pltpu.VMEM((TQ, Hp), jnp.bfloat16),   # cached q tile (bf16)
                pltpu.VMEM((TQ, 1), jnp.float32),     # running max
                pltpu.VMEM((TQ, 1), jnp.float32),     # running denom
                pltpu.VMEM((TQ, Hp), jnp.float32),    # output accumulator
            ],
        ),
        compiler_params=pltpu.CompilerParams(
            dimension_semantics=("parallel", "arbitrary"),
            vmem_limit_bytes=_vmem_limit_bytes(),
        ),
    )(qi_arr, kvi_arr, x_bf, x_bf, wq, wkv, neg_mask)

    # Lane-dense 128-wide store kept inside the kernel; drop the padding here.
    return out_padded[..., :H]


def head_reference(x, w_key, w_query, w_value):
    """Pure-JAX reference replicating the PyTorch forward exactly (f32)."""
    B, T, C = x.shape
    k = x @ w_key.T
    q = x @ w_query.T
    v = x @ w_value.T
    wei = (q @ jnp.swapaxes(k, -2, -1)) / math.sqrt(C)
    tril = jnp.tril(jnp.ones((T, T), dtype=bool))
    wei = jnp.where(tril, wei, -jnp.inf)
    wei = jax.nn.softmax(wei, axis=-1)
    return wei @ v


if __name__ == "__main__":
    # Shapes consistent with the module: batch=2, seq(T)=8, n_embed=32,
    # head_size=16, block_size=8 (T <= block_size).
    B, T, C, H = 2, 8, 32, 16

    key = jax.random.PRNGKey(0)
    kx, kk, kq, kv = jax.random.split(key, 4)

    x = jax.random.normal(kx, (B, T, C), dtype=jnp.float32)
    # nn.Linear(n_embed, head_size, bias=False).weight has shape (head_size, n_embed)
    bound = 1.0 / math.sqrt(C)
    w_key = jax.random.uniform(kk, (H, C), jnp.float32, -bound, bound)
    w_query = jax.random.uniform(kq, (H, C), jnp.float32, -bound, bound)
    w_value = jax.random.uniform(kv, (H, C), jnp.float32, -bound, bound)

    out = head_forward(x, w_key, w_query, w_value)
    jax.block_until_ready(out)

    ref = head_reference(x, w_key, w_query, w_value)
    assert out.shape == (B, T, H)
    # Tolerance loosened for bf16 MXU operands (q/k/v/p in bf16, f32 accumulate).
    assert jnp.allclose(out, ref, atol=4e-2, rtol=4e-2), "mismatch vs reference"

    print("KERNEL_OK")
</pallas_src>

<mosaic_0001>
module attributes {stable_mosaic.version = 11 : i64} {
  func.func @_flash_head_kernel(%arg0: i32, %arg1: i32, %arg2: memref<1xi32, #tpu.memory_space<smem>>, %arg3: memref<1xi32, #tpu.memory_space<smem>>, %arg4: memref<1x8x32xbf16, #tpu.memory_space<vmem>>, %arg5: memref<1x8x32xbf16, #tpu.memory_space<vmem>>, %arg6: memref<32x128xbf16, #tpu.memory_space<vmem>>, %arg7: memref<32x256xbf16, #tpu.memory_space<vmem>>, %arg8: memref<8x8xf32, #tpu.memory_space<vmem>>, %arg9: memref<1x8x128xf32, #tpu.memory_space<vmem>>, %arg10: memref<8x128xbf16, #tpu.memory_space<vmem>>, %arg11: memref<8x1xf32, #tpu.memory_space<vmem>>, %arg12: memref<8x1xf32, #tpu.memory_space<vmem>>, %arg13: memref<8x128xf32, #tpu.memory_space<vmem>>) attributes {dimension_semantics = [#tpu.dimension_semantics<parallel>, #tpu.dimension_semantics<arbitrary>], iteration_bounds = array<i64: 2, 1>, scalar_prefetch = 2 : i64, scratch_operands = 4 : i64, tpu.core_type = #tpu.core_type<tc>, window_params = [{transform_indices = @transform_0, window_bounds = array<i64: 1, 8, 32>}, {transform_indices = @transform_1, window_bounds = array<i64: 1, 8, 32>}, {pipeline_mode = #tpu.pipeline_mode<synchronous>, transform_indices = @transform_2, window_bounds = array<i64: 32, 128>}, {pipeline_mode = #tpu.pipeline_mode<synchronous>, transform_indices = @transform_3, window_bounds = array<i64: 32, 256>}, {pipeline_mode = #tpu.pipeline_mode<synchronous>, transform_indices = @transform_4, window_bounds = array<i64: 8, 8>}, {transform_indices = @transform_5, window_bounds = array<i64: 1, 8, 128>}]} {
    %0 = arith.index_cast %arg1 : i32 to index
    %1 = memref.load %arg2[%0] : memref<1xi32, #tpu.memory_space<smem>>
    %2 = arith.index_cast %arg1 : i32 to index
    %3 = memref.load %arg3[%2] : memref<1xi32, #tpu.memory_space<smem>>
    %c0_i32 = arith.constant 0 : i32
    %4 = arith.cmpi eq, %3, %c0_i32 : i32
    %5 = arith.extui %4 : i1 to i32
    %c0_i32_0 = arith.constant 0 : i32
    %6 = arith.cmpi ne, %5, %c0_i32_0 : i32
    scf.if %6 {
      %c0_27 = arith.constant 0 : index
      %c0_28 = arith.constant 0 : index
      %c0_29 = arith.constant 0 : index
      %48 = vector.load %arg4[%c0_27, %c0_28, %c0_29] : memref<1x8x32xbf16, #tpu.memory_space<vmem>>, vector<1x8x32xbf16>
      %49 = vector.shape_cast %48 : vector<1x8x32xbf16> to vector<8x32xbf16>
      %c0_30 = arith.constant 0 : index
      %c0_31 = arith.constant 0 : index
      %50 = vector.load %arg6[%c0_30, %c0_31] : memref<32x128xbf16, #tpu.memory_space<vmem>>, vector<32x128xbf16>
      %cst_32 = arith.constant dense<0.000000e+00> : vector<8x128xf32>
      %51 = tpu.matmul %49, %50, %cst_32 {dimension_numbers = #tpu.dot_dimension_numbers<[1], [0], [0], [1], [0, 0, 1, 1], [], []>} : vector<8x32xbf16>, vector<32x128xbf16>, vector<8x128xf32> -> vector<8x128xf32>
      %52 = arith.truncf %51 : vector<8x128xf32> to vector<8x128xbf16>
      %c0_33 = arith.constant 0 : index
      %c0_34 = arith.constant 0 : index
      %53 = vector.load %arg10[%c0_33, %c0_34] : memref<8x128xbf16, #tpu.memory_space<vmem>>, vector<8x128xbf16>
      tpu.vector_store %arg10[%c0_33, %c0_34], %52 {strides = array<i32>} : memref<8x128xbf16, #tpu.memory_space<vmem>>, vector<8x128xbf16>,
      %cst_35 = arith.constant 0xFF800000 : f32
      %54 = vector.broadcast %cst_35 : f32 to vector<8x1xf32>
      %c0_36 = arith.constant 0 : index
      %c0_37 = arith.constant 0 : index
      %55 = vector.load %arg11[%c0_36, %c0_37] : memref<8x1xf32, #tpu.memory_space<vmem>>, vector<8x1xf32>
      tpu.vector_store %arg11[%c0_36, %c0_37], %54 {strides = array<i32>} : memref<8x1xf32, #tpu.memory_space<vmem>>, vector<8x1xf32>,
      %cst_38 = arith.constant 0.000000e+00 : f32
      %56 = vector.broadcast %cst_38 : f32 to vector<8x1xf32>
      %c0_39 = arith.constant 0 : index
      %c0_40 = arith.constant 0 : index
      %57 = vector.load %arg12[%c0_39, %c0_40] : memref<8x1xf32, #tpu.memory_space<vmem>>, vector<8x1xf32>
      tpu.vector_store %arg12[%c0_39, %c0_40], %56 {strides = array<i32>} : memref<8x1xf32, #tpu.memory_space<vmem>>, vector<8x1xf32>,
      %cst_41 = arith.constant 0.000000e+00 : f32
      %58 = vector.broadcast %cst_41 : f32 to vector<8x128xf32>
      %c0_42 = arith.constant 0 : index
      %c0_43 = arith.constant 0 : index
      %59 = vector.load %arg13[%c0_42, %c0_43] : memref<8x128xf32, #tpu.memory_space<vmem>>, vector<8x128xf32>
      tpu.vector_store %arg13[%c0_42, %c0_43], %58 {strides = array<i32>} : memref<8x128xf32, #tpu.memory_space<vmem>>, vector<8x128xf32>,
    } else {
    }
    %c0 = arith.constant 0 : index
    %c0_1 = arith.constant 0 : index
    %c0_2 = arith.constant 0 : index
    %7 = vector.load %arg5[%c0, %c0_1, %c0_2] : memref<1x8x32xbf16, #tpu.memory_space<vmem>>, vector<1x8x32xbf16>
    %8 = vector.shape_cast %7 : vector<1x8x32xbf16> to vector<8x32xbf16>
    %c0_3 = arith.constant 0 : index
    %c0_4 = arith.constant 0 : index
    %9 = vector.load %arg7[%c0_3, %c0_4] : memref<32x256xbf16, #tpu.memory_space<vmem>>, vector<32x256xbf16>
    %cst = arith.constant dense<0.000000e+00> : vector<8x256xf32>
    %10 = tpu.matmul %8, %9, %cst {dimension_numbers = #tpu.dot_dimension_numbers<[1], [0], [0], [1], [0, 0, 1, 1], [], []>} : vector<8x32xbf16>, vector<32x256xbf16>, vector<8x256xf32> -> vector<8x256xf32>
    %11 = vector.extract_strided_slice %10 {offsets = [0, 0], sizes = [8, 128], strides = [1, 1]} : vector<8x256xf32> to vector<8x128xf32>
    %12 = arith.truncf %11 : vector<8x128xf32> to vector<8x128xbf16>
    %13 = vector.extract_strided_slice %10 {offsets = [0, 128], sizes = [8, 128], strides = [1, 1]} : vector<8x256xf32> to vector<8x128xf32>
    %14 = arith.truncf %13 : vector<8x128xf32> to vector<8x128xbf16>
    %c0_5 = arith.constant 0 : index
    %c0_6 = arith.constant 0 : index
    %15 = vector.load %arg10[%c0_5, %c0_6] : memref<8x128xbf16, #tpu.memory_space<vmem>>, vector<8x128xbf16>
    %cst_7 = arith.constant dense<0.000000e+00> : vector<8x8xf32>
    %16 = tpu.matmul %15, %12, %cst_7 {dimension_numbers = #tpu.dot_dimension_numbers<[1], [1], [0], [0], [0, 0, 1, 0], [], []>} : vector<8x128xbf16>, vector<8x128xbf16>, vector<8x8xf32> -> vector<8x8xf32>
    %17 = arith.cmpi eq, %3, %1 : i32
    %c0_8 = arith.constant 0 : index
    %c0_9 = arith.constant 0 : index
    %18 = vector.load %arg8[%c0_8, %c0_9] : memref<8x8xf32, #tpu.memory_space<vmem>>, vector<8x8xf32>
    %cst_10 = arith.constant 0.000000e+00 : f32
    %19 = vector.broadcast %cst_10 : f32 to vector<8x8xf32>
    %20 = arith.select %17, %18, %19 : vector<8x8xf32>
    %21 = arith.addf %16, %20 : vector<8x8xf32>
    %c0_11 = arith.constant 0 : index
    %c0_12 = arith.constant 0 : index
    %22 = vector.load %arg11[%c0_11, %c0_12] : memref<8x1xf32, #tpu.memory_space<vmem>>, vector<8x1xf32>
    %cst_13 = arith.constant dense<0xFF800000> : vector<8xf32>
    %23 = vector.multi_reduction <maximumf>, %21, %cst_13 [1] : vector<8x8xf32> to vector<8xf32>
    %24 = vector.shape_cast %23 : vector<8xf32> to vector<8x1xf32>
    %25 = arith.maximumf %22, %24 : vector<8x1xf32>
    %26 = arith.subf %22, %25 : vector<8x1xf32>
    %27 = math.exp %26 : vector<8x1xf32>
    %28 = vector.broadcast %25 : vector<8x1xf32> to vector<8x8xf32>
    %29 = arith.subf %21, %28 : vector<8x8xf32>
    %30 = math.exp %29 : vector<8x8xf32>
    %c0_14 = arith.constant 0 : index
    %c0_15 = arith.constant 0 : index
    %31 = vector.load %arg12[%c0_14, %c0_15] : memref<8x1xf32, #tpu.memory_space<vmem>>, vector<8x1xf32>
    %32 = arith.mulf %27, %31 : vector<8x1xf32>
    %cst_16 = arith.constant dense<0.000000e+00> : vector<8xf32>
    %33 = vector.multi_reduction <add>, %30, %cst_16 [1] : vector<8x8xf32> to vector<8xf32>
    %34 = vector.shape_cast %33 : vector<8xf32> to vector<8x1xf32>
    %35 = arith.addf %32, %34 : vector<8x1xf32>
    %c0_17 = arith.constant 0 : index
    %c0_18 = arith.constant 0 : index
    %36 = vector.load %arg12[%c0_17, %c0_18] : memref<8x1xf32, #tpu.memory_space<vmem>>, vector<8x1xf32>
    tpu.vector_store %arg12[%c0_17, %c0_18], %35 {strides = array<i32>} : memref<8x1xf32, #tpu.memory_space<vmem>>, vector<8x1xf32>,
    %c0_19 = arith.constant 0 : index
    %c0_20 = arith.constant 0 : index
    %37 = vector.load %arg13[%c0_19, %c0_20] : memref<8x128xf32, #tpu.memory_space<vmem>>, vector<8x128xf32>
    %38 = vector.broadcast %27 : vector<8x1xf32> to vector<8x128xf32>
    %39 = arith.mulf %38, %37 : vector<8x128xf32>
    %40 = arith.truncf %30 : vector<8x8xf32> to vector<8x8xbf16>
    %cst_21 = arith.constant dense<0.000000e+00> : vector<8x128xf32>
    %41 = tpu.matmul %40, %14, %cst_21 {dimension_numbers = #tpu.dot_dimension_numbers<[1], [0], [0], [1], [0, 0, 1, 1], [], []>} : vector<8x8xbf16>, vector<8x128xbf16>, vector<8x128xf32> -> vector<8x128xf32>
    %42 = arith.addf %39, %41 : vector<8x128xf32>
    %c0_22 = arith.constant 0 : index
    %c0_23 = arith.constant 0 : index
    %43 = vector.load %arg13[%c0_22, %c0_23] : memref<8x128xf32, #tpu.memory_space<vmem>>, vector<8x128xf32>
    tpu.vector_store %arg13[%c0_22, %c0_23], %42 {strides = array<i32>} : memref<8x128xf32, #tpu.memory_space<vmem>>, vector<8x128xf32>,
    %c0_24 = arith.constant 0 : index
    %c0_25 = arith.constant 0 : index
    %44 = vector.load %arg11[%c0_24, %c0_25] : memref<8x1xf32, #tpu.memory_space<vmem>>, vector<8x1xf32>
    tpu.vector_store %arg11[%c0_24, %c0_25], %25 {strides = array<i32>} : memref<8x1xf32, #tpu.memory_space<vmem>>, vector<8x1xf32>,
    %45 = arith.cmpi eq, %3, %1 : i32
    %46 = arith.extui %45 : i1 to i32
    %c0_i32_26 = arith.constant 0 : i32
    %47 = arith.cmpi ne, %46, %c0_i32_26 : i32
    scf.if %47 {
      %c0_27 = arith.constant 0 : index
      %c0_28 = arith.constant 0 : index
      %48 = vector.load %arg12[%c0_27, %c0_28] : memref<8x1xf32, #tpu.memory_space<vmem>>, vector<8x1xf32>
      %49 = tpu.reciprocal %48 : vector<8x1xf32> -> vector<8x1xf32>
      %c0_29 = arith.constant 0 : index
      %c0_30 = arith.constant 0 : index
      %50 = vector.load %arg13[%c0_29, %c0_30] : memref<8x128xf32, #tpu.memory_space<vmem>>, vector<8x128xf32>
      %51 = vector.broadcast %49 : vector<8x1xf32> to vector<8x128xf32>
      %52 = arith.mulf %50, %51 : vector<8x128xf32>
      %c0_31 = arith.constant 0 : index
      %c0_32 = arith.constant 0 : index
      %c0_33 = arith.constant 0 : index
      %53 = vector.load %arg9[%c0_31, %c0_32, %c0_33] : memref<1x8x128xf32, #tpu.memory_space<vmem>>, vector<1x8x128xf32>
      %54 = vector.shape_cast %53 : vector<1x8x128xf32> to vector<8x128xf32>
      %55 = vector.shape_cast %52 : vector<8x128xf32> to vector<1x8x128xf32>
      tpu.vector_store %arg9[%c0_31, %c0_32, %c0_33], %55 {strides = array<i32>} : memref<1x8x128xf32, #tpu.memory_space<vmem>>, vector<1x8x128xf32>,
    } else {
    }
    return
  }
  func.func @transform_0(%arg0: i32, %arg1: i32, %arg2: memref<1xi32, #tpu.memory_space<smem>>, %arg3: memref<1xi32, #tpu.memory_space<smem>>) -> (i32, i32, i32) {
    %0 = arith.index_cast %arg1 : i32 to index
    %1 = memref.load %arg2[%0] : memref<1xi32, #tpu.memory_space<smem>>
    %c0_i32 = arith.constant 0 : i32
    %c0_i32_0 = arith.constant 0 : i32
    return %arg0, %1, %c0_i32 : i32, i32, i32
  }
  func.func @transform_1(%arg0: i32, %arg1: i32, %arg2: memref<1xi32, #tpu.memory_space<smem>>, %arg3: memref<1xi32, #tpu.memory_space<smem>>) -> (i32, i32, i32) {
    %0 = arith.index_cast %arg1 : i32 to index
    %1 = memref.load %arg3[%0] : memref<1xi32, #tpu.memory_space<smem>>
    %c0_i32 = arith.constant 0 : i32
    %c0_i32_0 = arith.constant 0 : i32
    return %arg0, %1, %c0_i32 : i32, i32, i32
  }
  func.func @transform_2(%arg0: i32, %arg1: i32, %arg2: memref<1xi32, #tpu.memory_space<smem>>, %arg3: memref<1xi32, #tpu.memory_space<smem>>) -> (i32, i32) {
    %c0_i32 = arith.constant 0 : i32
    %c0_i32_0 = arith.constant 0 : i32
    %c0_i32_1 = arith.constant 0 : i32
    return %c0_i32, %c0_i32_0 : i32, i32
  }
  func.func @transform_3(%arg0: i32, %arg1: i32, %arg2: memref<1xi32, #tpu.memory_space<smem>>, %arg3: memref<1xi32, #tpu.memory_space<smem>>) -> (i32, i32) {
    %c0_i32 = arith.constant 0 : i32
    %c0_i32_0 = arith.constant 0 : i32
    %c0_i32_1 = arith.constant 0 : i32
    return %c0_i32, %c0_i32_0 : i32, i32
  }
  func.func @transform_4(%arg0: i32, %arg1: i32, %arg2: memref<1xi32, #tpu.memory_space<smem>>, %arg3: memref<1xi32, #tpu.memory_space<smem>>) -> (i32, i32) {
    %c0_i32 = arith.constant 0 : i32
    %c0_i32_0 = arith.constant 0 : i32
    %c0_i32_1 = arith.constant 0 : i32
    return %c0_i32, %c0_i32_0 : i32, i32
  }
  func.func @transform_5(%arg0: i32, %arg1: i32, %arg2: memref<1xi32, #tpu.memory_space<smem>>, %arg3: memref<1xi32, #tpu.memory_space<smem>>) -> (i32, i32, i32) {
    %0 = arith.index_cast %arg1 : i32 to index
    %1 = memref.load %arg2[%0] : memref<1xi32, #tpu.memory_space<smem>>
    %c0_i32 = arith.constant 0 : i32
    %c0_i32_0 = arith.constant 0 : i32
    return %arg0, %1, %c0_i32 : i32, i32, i32
  }
}

</mosaic_0001>

<bundles_post_ra>
// kernel: tpu_custom_call.1
= control target key start
LH: loop header
LB: loop body
LE: loop exit
PB: predicated region body
PF: predicated region fallthrough
CT: control target
= control target key end

     0   :  { %s1513_s0 = inlined_call_operand.<no memory space> [shape: s32[1], index: 0, kind: input, shape index: {}]   ;;  %s1514_s1 = inlined_call_operand.<no memory space> [shape: s32[1], index: 1, kind: input, shape index: {}]   ;;  %s1515_s2 = inlined_call_operand.hbm [shape: bf16[2,8,32], index: 2, kind: input, shape index: {}]   ;;  %s1516_s3 = inlined_call_operand.vmem [shape: bf16[2,8,32], index: 3, kind: input, shape index: {}]   ;;  %s1517_s4 = inlined_call_operand.hbm [shape: bf16[32,128], index: 4, kind: input, shape index: {}]   ;;  %s1518_s5 = inlined_call_operand.hbm [shape: bf16[32,256], index: 5, kind: input, shape index: {}]   ;;  %s1519_s6 = inlined_call_operand.vmem [shape: f32[8,8], index: 6, kind: input, shape index: {}]   ;;  %s1520_s7 = inlined_call_operand.hbm [shape: f32[2,8,128], index: 7, kind: output, shape index: {}]  }
   0x1   :  { %1529 = sst [smem:[#allocation22_spill]] %s1517_s4 }
   0x2   :  { %1530 = sst [smem:[#allocation23_spill]] %s1518_s5 }
   0x3   :  { %12 = sst [smem:[#allocation7]] %s1513_s0 }
   0x4   :  { %13 = sst [smem:[#allocation8]] %s1514_s1 }
   0x5   :  { %14 = vsyncpa [#allocation10], 0 }
   0x6   :  { %16 = vsyncpa [#allocation10 + $0x1], 0 }
   0x7   :  { %17 = vsyncpa [#allocation13], 0 }
   0x8   :  { %18 = vsyncpa [#allocation11], 0 }
   0x9   :  { %20 = vsyncpa [#allocation11 + $0x1], 0  ;;  %s1204_s28 = smov 0   ;;  %s1206_s29 = smov 0  }
   0xa   :  { %s1208_s30 = smov 0   ;;  %s1210_s8 = smov 0  }
   0xb   :  { %s1212_s9 = smov 0   ;;  %s1214_s0 = smov 0  }
   0xc   :  { %s1216_s10 = smov 0   ;;  %s1218_s1 = smov 0  }
   0xd   :  { %s1220_s11 = smov 0  }
   0xe LB: > { %1531 = sst [smem:[#allocation19_spill]] %s1109_s28  ;;  %s751_s12 = sadd.s32 4294967295, %s1141_s11   ;;  %s1141_s11 = sphi %s1220_s11, %s26_s11   ;;  %s1137_s1 = sphi %s1218_s1, %s1561_s1   ;;  %s1133_s10 = sphi %s1216_s10, %s1560_s10   ;;  %s1129_s0 = sphi %s1214_s0, %s1559_s0   ;;  %s1125_s9 = sphi %s1212_s9, %s1558_s9   ;;  %s1121_s8 = sphi %s1210_s8, %s1557_s8   ;;  %s1117_s30 = sphi %s1208_s30, %s1556_s30   ;;  %s1113_s29 = sphi %s1206_s29, %s1555_s29   ;;  %s1109_s28 = sphi %s1204_s28, %s1554_s28  }
   0xf   : > { %s752_s13 = sadd.s32 4294967294, %s1141_s11   ;;  %p62_p0 = scmp.ne.s32.totalorder %s1125_s9, %s1121_s8 }
  0x10   : > { %p1250_p1 = scmp.eq.s32.totalorder %s751_s12, 0  ;;  %p182_p2 = scmp.ne.s32.totalorder %s1117_s30, %s1113_s29 }
  0x11   : > { %p183_p3 = scmp.eq.s32.totalorder %s751_s12, 1  ;;  %p188_p5 = scmp.ne.s32.totalorder %s1113_s29, %s1109_s28 }
  0x12   : > { %s1532_s14 = scalar_select %p1250_p1, 1, 0 }
  0x13   : > { %p1258_p4 = por %p1250_p1, %p62_p0  ;;  %p1264_p6 = por %p183_p3, %p182_p2 }
  0x14   : > { %p189_p7 = scmp.eq.s32.totalorder %s752_s13, 1  ;;  %p753_p8 = scmp.ge.s32.totalorder %s1141_s11, 1 }
  0x15   : > { %s1533_s15 = scalar_select %p1258_p4, 1, 0 }
  0x16   : > { %s1534_s16 = scalar_select %p1264_p6, 1, 0 }
  0x17   : > { %p196_p9 = scmp.lt.s32.totalorder %s1141_s11, 3  ;;  %p1270_p10 = por %p189_p7, %p188_p5 }
  0x18   : > { %s1143_s19 = smov [#allocation12]   ;;  %s1144_s22 = smov [#allocation14]  }
  0x19   : > { %s1535_s17 = scalar_select %p1270_p10, 1, 0 }
  0x1a   : > { %p1274_p11 = pnand %p753_p8, %p196_p9  ;;  %s208_s20 = sshll.u32 %s1143_s19, 4  ;;  %s209_s20 = int_to_ptr.vmem [resolvable:$true] %s208_s20 }
  0x1b   : > { %1536 = sst [smem:[#allocation20_spill]] %s1535_s17  ;;  %s221_s23 = sshll.u32 %s1144_s22, 4  ;;  %s1287_s23 = int_to_ptr.vmem [resolvable:$true] %s221_s23 }
  0x1c   : > { %s1537_s18 = scalar_select %p1274_p11, 1, 0 }
  0x1d   : > { %p819_p12 = pneg %p1274_p11  ;;  %s1539_s4 = sld [smem:[#allocation22_spill]] }
  0x1f   : > { %p1283_p0 = pnand %p819_p12, %p1250_p1 }
  0x21   : > { %p947_p3 = pneg %p1283_p0 }
  0x23   : > { %s945_s26 = scalar_lea.hbm %s1539_s4, 256 }
  0x24   : > { %p946_p2 = scmp.ne.s32.totalorder %s1539_s4, %s945_s26  ;;  %p952_p8 = scmp.lt.u32.totalorder %s945_s26, %s1539_s4 }
  0x26   : > { %p948_p5 = pnand %p947_p3, %p946_p2 }
  0x28   : > { %p949_p7 = pneg %p948_p5 }
  0x2a   : > { %p954_p9 = pnand %p952_p8, %p949_p7 }
  0x2c   : > { %957 = shalt.err (!%p954_p9)
}
  0x2d   : > { %s958_s19 = scalar_lea.vmem %s209_s20, 256  ;;  %p966_p6 = scmp.lt.s32.totalorder %s209_s20, %s209_s20 }
  0x2e   : > { %p959_p12 = scmp.ne.s32.totalorder %s209_s20, %s958_s19  ;;  %p967_p1 = scmp.lt.s32.totalorder %s958_s19, %s958_s19 }
  0x30   : > { %p961_p13 = pnand %p959_p12, %p947_p3  ;;  %p968_p4 = por %p967_p1, %p966_p6 }
  0x32   : > { %p962_p10 = pneg %p961_p13 }
  0x34   : > { %p969_p11 = pnand %p968_p4, %p962_p10 }
  0x36   : > { %972 = shalt.err (!%p969_p11)
}
  0x37   : > { %s1145_s22 = smov 64   ;;  %s1146_s24 = smov 4  }
  0x38   : > { %822 = dma.hbm_to_vmem [thread:$0]  (!%p1283_p0), %s1539_s4, 256, %s209_s20, [#allocation13], %s1145_s22, %s1145_s22, %s1146_s24  }
  0x39   : > { %s1540_s5 = sld [smem:[#allocation23_spill]] }
  0x3f   : > { %s973_s12 = scalar_lea.hbm %s1540_s5, 512 }
  0x40   : > { %p974_p13 = scmp.ne.s32.totalorder %s1540_s5, %s973_s12  ;;  %p980_p6 = scmp.lt.u32.totalorder %s973_s12, %s1540_s5 }
  0x42   : > { %p976_p1 = pnand %p974_p13, %p947_p3 }
  0x44   : > { %p977_p4 = pneg %p976_p1 }
  0x46   : > { %p982_p10 = pnand %p980_p6, %p977_p4 }
  0x48   : > { %985 = shalt.err (!%p982_p10)
}
  0x49   : > { %s986_s20 = scalar_lea.vmem %s1287_s23, 512  ;;  %p994_p7 = scmp.lt.s32.totalorder %s1287_s23, %s1287_s23 }
  0x4a   : > { %p987_p11 = scmp.ne.s32.totalorder %s1287_s23, %s986_s20  ;;  %p995_p8 = scmp.lt.s32.totalorder %s986_s20, %s986_s20 }
  0x4c   : > { %p989_p2 = pnand %p987_p11, %p947_p3  ;;  %p996_p9 = por %p995_p8, %p994_p7 }
  0x4e   : > { %p990_p5 = pneg %p989_p2 }
  0x50   : > { %p997_p12 = pnand %p996_p9, %p990_p5 }
  0x52   : > { %1000 = shalt.err (!%p997_p12)
}
  0x53   : > { %s1147_s28 = smov 128   ;;  %s1148_s17 = smov 8  }
  0x54   : > { %825 = dma.hbm_to_vmem [thread:$0]  (!%p1283_p0), %s1540_s5, 512, %s1287_s23, [#allocation13], %s1147_s28, %s1147_s28, %s1148_s17  }
  0x55   : > { %s42_s25 = sld [smem:[#allocation7]]  ;;  %s38_s26 = sadd.s32 1, %s1137_s1 }
  0x56   : > { %s49_s27 = sadd.s32 1, %s1129_s0  ;;  %p40_p3 = scmp.ge.s32.totalorder %s38_s26, 2 }
  0x57   : > { %p56_p13 = scmp.ne.s32.totalorder %s1129_s0, %s1125_s9  ;;  %p57_p1 = scmp.eq.s32.totalorder %s1141_s11, 0 }
  0x58   : > { %s172_s8 = sadd.s32 1, %s1117_s30  ;;  %s1563_s26 = smov (%p40_p3, %s38_s26), 0 }
  0x59   : > { %1541 = sst [smem:[#allocation21_spill]] %s1563_s26  ;;  %p1344_p4 = por %p57_p1, %p56_p13 }
  0x5a   : > { %p836_p6 = scmp.lt.s32.totalorder %s1141_s11, 2  ;;  %s44_s23 = ssub.s32 %s1137_s1, %s1563_s26 }
  0x5b   : > { %s238_s12 = sand.u32 1, %s1129_s0   ;;  %p47_p0 = scmp.eq.s32.totalorder %s44_s23, 0 }
  0x5c   : > { %s757_s13 = sshll.u32 %s238_s12, 2  ;;  %s247_s19 = sadd.s32 %s1137_s1, %s42_s25 }
  0x5d   : > { %s1354_s20 = scalar_select %p47_p0, %s1129_s0, %s49_s27  }
  0x5e   : > { %s1357_s28 = scalar_select %p47_p0, %s1117_s30, %s172_s8  }
  0x5f   : > { %s758_s17 = sshll.u32 %s247_s19, 6  ;;  %s242_s5 = scalar_lea.vmem [#allocation9], %s757_s13 }
  0x60   : > { %s1362_s4 = scalar_lea.hbm %s1515_s2, %s758_s17  ;;  %s251_s26 = sshll.u32 %s242_s5, 4  ;;  %s1364_s26 = int_to_ptr.vmem [resolvable:$true] %s251_s26 }
  0x61   : > { %p1370_p10 = pnand %p836_p6, %p1344_p4  ;;  %s239_s27 = scalar_lea.sflag [#allocation10], %s238_s12 }
  0x62   : > { %s1001_s8 = scalar_lea.hbm %s1362_s4, 64  ;;  %s1006_s21 = scalar_lea.hbm %s1515_s2, 128 }
  0x63   : > { %p1002_p11 = scmp.ne.s32.totalorder %s1362_s4, %s1001_s8  ;;  %p1003_p2 = pneg %p1370_p10 }
  0x64   : > { %p1007_p8 = scmp.lt.u32.totalorder %s1362_s4, %s1515_s2  ;;  %p1008_p9 = scmp.lt.u32.totalorder %s1006_s21, %s1001_s8 }
  0x65   : > { %p1004_p5 = pnand %p1003_p2, %p1002_p11  ;;  %p1010_p3 = scmp.lt.u32.totalorder %s1001_s8, %s1362_s4 }
  0x66   : > { %p1009_p12 = por %p1008_p9, %p1007_p8 }
  0x67   : > { %p1005_p7 = pneg %p1004_p5 }
  0x68   : > { %p1011_p13 = por %p1010_p3, %p1009_p12 }
  0x6a   : > { %p1012_p1 = pnand %p1011_p13, %p1005_p7 }
  0x6c   : > { %1015 = shalt.err (!%p1012_p1)
}
  0x6d   : > { %s1016_s12 = scalar_lea.vmem %s1364_s26, 64  ;;  %s1149_s17 = smov [#allocation9]  }
  0x6e   : > { %p1017_p4 = scmp.ne.s32.totalorder %s1364_s26, %s1016_s12  ;;  %s1021_s22 = sshll.u32 %s1149_s17, 4  ;;  %s1022_s22 = int_to_ptr.vmem [resolvable:$false] %s1021_s22 }
  0x6f   : > { %s1023_s24 = scalar_lea.vmem %s1022_s22, 128  ;;  %p1024_p11 = scmp.lt.s32.totalorder %s1364_s26, %s1022_s22 }
  0x70   : > { %p1019_p6 = pnand %p1017_p4, %p1003_p2  ;;  %p1025_p5 = scmp.lt.s32.totalorder %s1023_s24, %s1016_s12 }
  0x72   : > { %p1020_p0 = pneg %p1019_p6  ;;  %p1026_p8 = por %p1025_p5, %p1024_p11 }
  0x74   : > { %p1027_p9 = pnand %p1026_p8, %p1020_p0 }
  0x76   : > { %1030 = shalt.err (!%p1027_p9)
}
  0x77   : > { %829 = dma.hbm_to_vmem [thread:$0]  (!%p1370_p10), %s1362_s4, 64, %s1364_s26, %s239_s27  }
  0x78   : > { %p1544_p7 = scmp.ne.s32.totalorder %s1537_s18, 0 }
  0x79   : > { %s274_s8 = sand.u32 (!%p1544_p7), 1, %s1125_s9   ;;  %p1545_p2 = scmp.ne.s32.totalorder (!%p1544_p7), %s1533_s15, 0 }
  0x7a   : > { %272 = sbr.rel (%p1544_p7) target bundleno = 1420 (0x58c), region = 40  ;;  %s1402_s5 = sshll.u32 (!%p1544_p7), %s274_s8, 2 }
  0x7b   : > { %s275_s23 = scalar_lea.sflag (!%p1544_p7), [#allocation10], %s274_s8  ;;  %s278_s21 = scalar_lea.vmem (!%p1544_p7), [#allocation9], %s1402_s5 }
  0x81   : > { %1096 = dma.done.wait (%p1545_p2), %s275_s23, 64  }
  0x82   : > { %1098 = vsyncadd (%p1545_p2), %s275_s23, 4294967232  ;;  %p1546_p12 = scmp.ne.s32.totalorder %s1532_s14, 0 }
  0x84   : > { %1100 = dma.done.wait (%p1546_p12), [#allocation13], 768  }
  0x85   : > { %1102 = vsyncadd (%p1546_p12), [#allocation13], 4294966528  ;;  %s318_s4 = sand.u32 1, %s1113_s29   ;;  %s1414_s18 = sld [smem:[#allocation8]] }
  0x86   : > { %s1416_s26 = sld [smem:[#allocation7]]  ;;  %p323_p10 = scmp.lt.s32.totalorder %s1133_s10, 1 }
  0x87   : > { %s1421_s15 = sshll.u32 %s318_s4, 3 }
  0x88   : > { %s324_s25 = scalar_select %p323_p10, %s1133_s10, 1 }
  0x89   : > { %s320_s22 = scalar_lea.vmem [#allocation15], %s1421_s15 }
  0x8b   : > { %p325_p3 = scmp.lt.s32.totalorder %s1414_s18, 0  ;;  %p765_p13 = scmp.ne.s32.totalorder %s1414_s18, 0 }
  0x8c   : > { %vm402_vm0 = vcmask (!%p765_p13), 7168   ;;  %v925_v0 = vld [vmem:[#allocation12] sm:$0xff] (!%p765_p13)   ;;  %v1150_v1 = vmov (!%p765_p13), 0.0   ;;  %v1151_v2 = vmov (!%p765_p13), -inf   ;;  %v926_v3 = vld [vmem:[#allocation12 + $0x8] sm:$0xff] (!%p765_p13)   ;;  %vm1152_vm1 = vmmov (!%p765_p13), 0  }
  0x8d   : > { %s326_s14 = scalar_select %p325_p3, %s1414_s18, 0 }
  0x8e   : > { %338 = sbr.rel (%p765_p13) target bundleno = 365 (0x16d), region = 56  ;;  %787 = vmatprep.subr.bf16.mxu0 (!%p765_p13), %v1150_v1  ;;  %403 = vst.msk [vmem:[#allocation3] sm:$0xff] (!%p765_p13), %vm402_vm0, %v1151_v2  ;;  %404 = vst.msk [vmem:[#allocation4] sm:$0xff] (!%p765_p13), %vm402_vm0, %v1150_v1  ;;  %791 = vmatprep.mubr.msk.bf16.mxu0 (!%p765_p13), %vm1152_vm1, %v1150_v1  ;;  %v339_v4 = vld [vmem:[%s278_s21] sm:$0xf] (!%p765_p13)  ;;  %vm356_vm2 = vcmask (!%p765_p13), 261120  }
  0x8f   : > { %s327_s27 = sadd.s32 %s326_s14, %s324_s25  ;;  %405 = vst [vmem:[#allocation5] sm:$0xff] (!%p765_p13), %v1150_v1  ;;  %788 = vmatpush3.bf16.msra.mxu0 (!%p765_p13), %v925_v0 }
  0x90   : > { %s1426_s13 = sshll.u32 %s327_s27, 2  ;;  %789 = vmatprep.subr.bf16.mxu0 (!%p765_p13), %v1150_v1 }
  0x91   : > { %s329_s17 = scalar_lea.vmem %s1516_s3, %s1426_s13 }
  0x93   : > { %790 = vmatpush3.bf16.msra.mxu0 (!%p765_p13), %v926_v3 }
  0x96   : > { %792 = vmatmul.mubr.msk.bf16.vlgmr.msra.gmra.mrb[0].mxu0 %vm356_vm2, %v339_v4 }
 0x169   : > { %v394_v5 = vpop.f32.mrb[0].mxu0 }
 0x16a   : > { %v400_v6 = vpack.c.bf16 %v394_v5, %v394_v5  ;;  %v793_v7 = vpop.f32.mrb[1].mxu0 }
 0x16b   : > { %v397_v8 = vpop.f32.mrb[2].mxu0 }
 0x16c   : > { %401 = vst [vmem:[#allocation2] sm:$0xf] %v400_v6  ;;  %v794_v9 = vpop.f32.mrb[3].mxu0 }
 0x16d PF: > { %v929_v10 = vld [vmem:[#allocation14 + $0x4] ss:$8 sps:$4 sm:$0xff]   ;;  %v931_v11 = vld [vmem:[#allocation14] ss:$8 sps:$4 sm:$0xff]   ;;  %v1153_v12 = vmov 0   ;;  %vm431_vm3 = vcmask 261120   ;;  %p479_p1 = scmp.eq.s32.totalorder %s1414_s18, %s1416_s26  ;;  %p775_p4 = scmp.ne.s32.totalorder %s1414_s18, %s1416_s26 }
 0x16e   : > { %467 = vmatprep.mubr.bf16.mxu0 %v1153_v12  ;;  %927 = vset.pattern.permute.xlu0 %v1153_v12  ;;  %v932_v13 = vld [vmem:[#allocation14 + $0x14] ss:$8 sps:$4 sm:$0xff]   ;;  %v934_v14 = vld [vmem:[#allocation14 + $0x10] ss:$8 sps:$4 sm:$0xff]   ;;  %v406_v15 = vld [vmem:[%s329_s17] sm:$0xf] }
 0x16f   : > { %435 = vmatprep.subr.bf16.mxu0 %v929_v10  ;;  %928 = vset.pattern.permute.xlu1 %v1153_v12  ;;  %v1154_v16 = vmov 0.0   ;;  %vm1155_vm4 = vmmov 0   ;;  %vm561_vm5 = vcmask 1043456   ;;  %s936_s5 = scalar_select %p479_p1, 255, 0  ;;  %vm526_vm6 = vcmask 64512  }
 0x170   : > { %436 = vmatpush1.bf16.msra.mxu0 %v931_v11  ;;  %795 = vmatprep.subr.bf16.mxu1 %v1154_v16  ;;  %v525_v32 = vld [vmem:[#allocation3] sm:$0xff]  ;;  %vm548_vm7 = vcmask 7168   ;;  %v542_v44 = vld [vmem:[#allocation4] sm:$0xff]  ;;  %v550_v48 = vld [vmem:[#allocation5] sm:$0xff]  ;;  %v1156_v57 = vmov (!%p775_p4), 0  }
 0x171   : > { %437 = vmatprep.subr.bf16.mxu0 %v932_v13  ;;  %797 = vmatprep.mubr.msk.bf16.mxu1 %vm1155_vm4, %v1154_v16  ;;  %v937_v25 = vld [vmem:[%s1519_s6] sm:%s936_s5] }
 0x173   : > { %v478_v24 = vld [vmem:[#allocation2] sm:$0xf] }
 0x174   : > { %438 = vmatpush1.bf16.msra.mxu0 %v934_v14 }
 0x175   : > { %801 = vmatprep.subr.bf16.mxu0 %v1154_v16 }
 0x177   : > { %773 = vmatmul.mubr.msk.bf16.vlgmr.msra.gmra.mrb[0].mxu0 %vm431_vm3, %v406_v15 }
 0x178   : > { %803 = vmatprep.mubr.msk.bf16.mxu0 %vm1155_vm4, %v1154_v16 }
 0x24a   : > { %v469_v17 = vpop.f32.mrb[0].mxu0 }
 0x24b   : > { %v476_v18 = vpack.c.bf16 %v469_v17, %v469_v17  ;;  %v471_v19 = vpop.f32.mrb[1].mxu0 }
 0x24c   : > { %v477_v20 = vpack.c.bf16 %v471_v19, %v471_v19  ;;  %v473_v21 = vpop.f32.mrb[2].mxu0 }
 0x24d   : > { %v474_v22 = vpop.f32.mrb[3].mxu0  ;;  %796 = vmatpush3.bf16.xpose.msra.mxu1 %v476_v18 }
 0x24e   : > { %v563_v23 = vsel %vm561_vm5, %v477_v20, 0 }
 0x24f   : > { %802 = vmatpush3.bf16.msra.mxu0 %v563_v23 }
 0x254   : > { %798 = vmatmul.mubr.bf16.vlgmr.msra.gmra.mrb[0].mxu1 %v478_v24 }
 0x327   : > { %v519_v26 = vpop.f32.mrb[0].mxu1 }
 0x328   : > { %v520_v27 = vadd.f32 %v937_v25, %v519_v26  ;;  %v799_v28 = vpop.f32.mrb[1].mxu1 }
 0x329   : > { %v522_v29 = vpop.f32.mrb[2].mxu1 }
 0x32a   : > { %v800_v30 = vpop.f32.mrb[3].mxu1  ;;  %v527_v31 = vsel %vm526_vm6, %v520_v27, -inf }
 0x32b   : > { %528 = vmax.xlane.f32.xlu0 %v527_v31 }
 0x3b8   : > { %v529_v33 = vpop.xlane.xlu0 %528 }
 0x3b9   : > { %v530_v34 = vmax.f32 %v525_v32, %v529_v33 }
 0x3bb   : > { %v531_v35 = vsub.f32 %v525_v32, %v530_v34  ;;  %607 = vst.msk [vmem:[#allocation3] sm:$0xff] %vm548_vm7, %v530_v34  ;;  %536 = vperm.xlu0 %927, %v530_v34  }
 0x3bd   : > { %v532_v42 = vmul.f32 1.442695, %v531_v35 }
 0x3bf   : > { %942 = vset.pattern.permute.xlu0 (!%p775_p4), %v1156_v57 }
 0x43a   : > { %v537_v36 = vpop.permute.xlu0 %536 }
 0x43b   : > { %v539_v37 = vsub.f32 %v520_v27, %v537_v36 }
 0x43d   : > { %v540_v38 = vmul.f32 1.442695, %v539_v37 }
 0x43f   : > { %938 = vpow2.f32 %v540_v38 }
 0x440   : > { %940 = vpow2.f32 %v532_v42 }
 0x449   : > { %v939_v39 = vpop.eup %938 }
 0x44a   : > { %v544_v40 = vsel %vm526_vm6, %v939_v39, 0.0  ;;  %v557_v41 = vpack.c.bf16 %v939_v39, %v939_v39  ;;  %v941_v43 = vpop.eup %940 }
 0x44b   : > { %545 = vadd.xlane.f32.xlu1 %v544_v40  ;;  %v543_v45 = vmul.f32 %v941_v43, %v542_v44 }
 0x44c   : > { %804 = vmatmul.mubr.msk.bf16.vlgmr.msra.gmra.mrb[4].mxu0 %vm526_vm6, %v557_v41 }
 0x45c   : > { %553 = vperm.xlu1 %928, %v941_v43  }
 0x4d8   : > { %v546_v46 = vpop.xlane.xlu1 %545 }
 0x4d9   : > { %v547_v47 = vadd.f32 %v546_v46, %v543_v45 }
 0x4db   : > { %549 = vst.msk [vmem:[#allocation4] sm:$0xff] %vm548_vm7, %v547_v47 }
 0x4dc   : > { %v554_v49 = vpop.permute.xlu1 %553 }
 0x4dd   : > { %v556_v50 = vmul.f32 %v554_v49, %v550_v48 }
 0x4e2   : > { %v611_v56 = vld [vmem:[#allocation4] sm:$0xff] (!%p775_p4) }
 0x4e3   : > { %943 = vrcp.f32 (!%p775_p4), %v611_v56 }
 0x4ed   : > { %v944_v58 = vpop.eup (!%p775_p4), %943 }
 0x4ee   : > { %616 = vperm.xlu0 (!%p775_p4), %942, %v944_v58  }
 0x51c   : > { %610 = sbr.rel (%p775_p4) target bundleno = 1393 (0x571), region = 60 }
 0x51f   : > { %v599_v51 = vpop.f32.mrb[4].mxu0 }
 0x520   : > { %v605_v52 = vadd.f32 %v599_v51, %v556_v50  ;;  %v805_v53 = vpop.f32.mrb[5].mxu0 }
 0x521   : > { %v602_v54 = vpop.f32.mrb[6].mxu0 }
 0x522   : > { %606 = vst [vmem:[#allocation5] sm:$0xff] %v605_v52  ;;  %v806_v55 = vpop.f32.mrb[7].mxu0 }
 0x529   : > { %v613_v59 = vld [vmem:[#allocation5] sm:$0xff] }
 0x56d   : > { %v617_v60 = vpop.permute.xlu0 %616 }
 0x56e   : > { %v619_v61 = vmul.f32 %v617_v60, %v613_v59 }
 0x570   : > { %620 = vst [vmem:[%s320_s22] sm:$0xff] %v619_v61 }
 0x571 PF: > { %s629_s25 = sld [smem:[#allocation7]]  ;;  %s637_s18 = sshll.u32 %s320_s22, 4  ;;  %s1458_s18 = int_to_ptr.vmem [resolvable:$true] %s637_s18 }
 0x572   : > { %s622_s12 = scalar_lea.sflag [#allocation11], %s318_s4  ;;  %s1031_s17 = scalar_lea.vmem %s1458_s18, 128 }
 0x573   : > { %p1032_p6 = scmp.ne.s32.totalorder %s1458_s18, %s1031_s17  ;;  %p1547_p0 = scmp.ne.s32.totalorder %s1534_s16, 0 }
 0x574   : > { %s1157_s15 = smov [#allocation15]  }
 0x575   : > { %p1033_p11 = pnand %p1032_p6, %p1547_p0  ;;  %s1035_s22 = sshll.u32 %s1157_s15, 4  ;;  %s1036_s22 = int_to_ptr.vmem [resolvable:$false] %s1035_s22 }
 0x576   : > { %p1038_p8 = scmp.lt.s32.totalorder %s1458_s18, %s1036_s22 }
 0x577   : > { %s633_s26 = sadd.s32 %s1133_s10, %s629_s25  ;;  %p1034_p5 = pneg %p1033_p11 }
 0x578   : > { %s777_s14 = sshll.u32 %s633_s26, 7  ;;  %s1037_s10 = scalar_lea.vmem %s1036_s22, 256 }
 0x579   : > { %s635_s19 = scalar_lea.hbm %s1520_s7, %s777_s14  ;;  %p1039_p9 = scmp.lt.s32.totalorder %s1037_s10, %s1031_s17 }
 0x57b   : > { %p1040_p7 = por %p1039_p9, %p1038_p8 }
 0x57d   : > { %p1041_p2 = pnand %p1040_p7, %p1034_p5 }
 0x57f   : > { %1044 = shalt.err (!%p1041_p2)
}
 0x580   : > { %s1045_s24 = scalar_lea.hbm %s635_s19, 128  ;;  %s1049_s5 = scalar_lea.hbm %s1520_s7, 256 }
 0x581   : > { %p1046_p12 = scmp.ne.s32.totalorder %s635_s19, %s1045_s24  ;;  %p1050_p13 = scmp.lt.u32.totalorder %s635_s19, %s1520_s7 }
 0x582   : > { %p1051_p1 = scmp.lt.u32.totalorder %s1049_s5, %s1045_s24  ;;  %p1053_p6 = scmp.lt.u32.totalorder %s1045_s24, %s635_s19 }
 0x583   : > { %p1047_p10 = pnand %p1046_p12, %p1547_p0 }
 0x584   : > { %p1052_p4 = por %p1051_p1, %p1050_p13 }
 0x585   : > { %p1048_p3 = pneg %p1047_p10 }
 0x586   : > { %p1054_p11 = por %p1053_p6, %p1052_p4 }
 0x588   : > { %p1055_p5 = pnand %p1054_p11, %p1048_p3 }
 0x58a   : > { %1058 = shalt.err (!%p1055_p5)
}
 0x58b   : > { %817 = dma.vmem_to_hbm [thread:$0]  (%p1547_p0), %s1458_s18, 128, %s635_s19, %s622_s12  }
 0x58c PF: > { %s1548_s25 = sld [smem:[#allocation19_spill]]  ;;  %s1549_s26 = sld [smem:[#allocation20_spill]] }
 0x58d   : > { %p1551_p9 = scmp.ge.s32.totalorder %s1141_s11, 2 }
 0x592   : > { %s649_s14 = sand.u32 1, %s1548_s25   ;;  %p1550_p8 = scmp.ne.s32.totalorder %s1549_s26, 0 }
 0x593   : > { %s650_s27 = scalar_lea.sflag [#allocation11], %s649_s14 }
 0x594   : > { %p831_p7 = pnand %p1551_p9, %p1550_p8 }
 0x596   : > { %1104 = dma.done.wait (!%p831_p7), %s650_s27, 128  }
 0x597   : > { %1106 = vsyncadd (!%p831_p7), %s650_s27, 4294967168  ;;  %s26_s11 = sadd.s32 1, %s1141_s11   ;;  %s1552_s13 = smov %s1357_s28 }
 0x598   : > { %p23_p2 = scmp.ge.s32.totalorder %s26_s11, 4   ;;  %s1553_s16 = sld [smem:[#allocation21_spill]] }
 0x599   : > { %s1554_s28 = smov %s1113_s29  ;;  %s1555_s29 = smov %s1117_s30 }
 0x59a   : > { %s1556_s30 = smov %s1552_s13  ;;  %s1557_s8 = smov %s1125_s9 }
 0x59b   : > { %s1558_s9 = smov %s1129_s0  ;;  %s1559_s0 = smov %s1354_s20 }
 0x59c   : > { %s1560_s10 = smov %s1137_s1  ;;  %25 = sbr.rel (!%p23_p2) target bundleno = 14 (0xe), region = 104 }
 0x59e   : > { %s1561_s1 = smov %s1553_s16 }
 0x5a3   :  { %655 = vsyncpa [#allocation10], 1 }
 0x5a4   :  { %657 = vsyncpa [#allocation10 + $0x1], 1 }
 0x5a5   :  { %658 = vsyncpa [#allocation13], 1 }
 0x5a6   :  { %659 = vsyncpa [#allocation11], 1 }
 0x5a7   :  { %661 = vsyncpa [#allocation11 + $0x1], 1 }

</bundles_post_ra>
